<compile_context>
chip_gen: v5e
topology: v5e:2x2
jax: 0.10.0
libtpu: 0.0.40
codegen_flags: <defaults>
</compile_context>

<pallas_src>
import math
import jax
import jax.numpy as jnp
from jax.experimental import pallas as pl
from jax.experimental.pallas import tpu as pltpu


# ---------------------------------------------------------------------------
# Kernel: one big MXU contraction per (batch, cout-tile, position-tile) block.
# ---------------------------------------------------------------------------
def _mapped_conv_kernel(vals_ref, w_ref, b_ref, out_ref):
    # vals_ref: (1, CK, T)      bf16   bilinear-combined samples (CK = Cin*K)
    # w_ref   : (Cout_t, CK)    bf16   conv weight slab (resident)
    # b_ref   : (Cout_t, 1)     f32    bias (resident)
    # out_ref : (1, Cout_t, T)  out dtype
    acc = jnp.dot(w_ref[...], vals_ref[0], preferred_element_type=jnp.float32)
    out_ref[0] = (acc + b_ref[...]).astype(out_ref.dtype)


# ---------------------------------------------------------------------------
# Bilinear corner indices / weights (zero-padding semantics at borders).
# ---------------------------------------------------------------------------
def _bilinear_corners(sample_map, H, W):
    """sample_map: (OH, OW, K, 2) with (x, y) pixel coords.

    Returns flat corner indices (4, OH, OW, K) int32 and bilinear weights
    (4, OH, OW, K) f32 (weights zeroed for out-of-bounds corners)."""
    sx = sample_map[..., 0]
    sy = sample_map[..., 1]
    x0 = jnp.floor(sx)
    y0 = jnp.floor(sy)
    x1 = x0 + 1.0
    y1 = y0 + 1.0
    w00 = (x1 - sx) * (y1 - sy)   # corner (y0, x0)
    w01 = (sx - x0) * (y1 - sy)   # corner (y0, x1)
    w10 = (x1 - sx) * (sy - y0)   # corner (y1, x0)
    w11 = (sx - x0) * (sy - y0)   # corner (y1, x1)
    cx = jnp.stack([x0, x1, x0, x1], axis=0).astype(jnp.int32)   # (4, OH, OW, K)
    cy = jnp.stack([y0, y0, y1, y1], axis=0).astype(jnp.int32)
    wts = jnp.stack([w00, w01, w10, w11], axis=0)
    valid = (cx >= 0) & (cx <= W - 1) & (cy >= 0) & (cy <= H - 1)
    wts = wts * valid.astype(wts.dtype)
    cxc = jnp.clip(cx, 0, W - 1)
    cyc = jnp.clip(cy, 0, H - 1)
    return cyc * W + cxc, wts


# ---------------------------------------------------------------------------
# Generation-aware tiling heuristics.
# ---------------------------------------------------------------------------
def _vmem_capacity_bytes():
    # v5e/v6e: 128 MiB; v7x: 64 MiB per TensorCore. Conservative fallback.
    try:
        return int(pltpu.get_tpu_info().vmem_capacity_bytes)
    except Exception:
        return 64 * 2**20


def _choose_tile_cout(cout):
    if cout <= 256:
        return cout
    for t in (256, 128):
        if cout % t == 0:
            return t
    return cout


def _choose_tile_p(P, other_steps, ck, cout_t, out_bytes, budget_bytes,
                   min_steps=4, max_tile=2048):
    """Largest lane tile (multiple of 128) over output positions such that the
    double-buffered streams + resident weight/bias fit the VMEM budget, while
    keeping >= min_steps total grid steps (v7x: 2 TCs need >= 2 steps each)."""
    if P <= 128:
        return P                                    # full-extent lane block
    fixed = 2 * (cout_t * ck * 2 + cout_t * 4) + (1 << 20)   # weight+bias (2x) + slack
    per_lane = 2 * (ck * 2 + cout_t * out_bytes)              # vals in + out, 2x buffered
    avail = max(budget_bytes - fixed, 1 << 18)
    P128 = -(-P // 128) * 128
    tile = 128
    while tile * 2 <= min(max_tile, P128) and (tile * 2) * per_lane <= avail:
        tile *= 2
    while tile > 128 and other_steps * (-(-P128 // tile)) < min_steps:
        tile //= 2
    return tile


# ---------------------------------------------------------------------------
# Wrapper.
# ---------------------------------------------------------------------------
def mapped_convolution(x, weight, bias, sample_map, *, tile_p=None, out_dtype=None):
    """x: (B, C_in, H, W); weight: (C_out, C_in, K); bias: (C_out,);
    sample_map: (OH, OW, K, 2) (x, y) -> out: (B, C_out, OH, OW)."""
    B, Cin, H, W = x.shape
    Cout, Cin_w, K = weight.shape
    assert Cin_w == Cin
    OH, OW, Km, two = sample_map.shape
    assert Km == K and two == 2
    P = OH * OW
    CK = Cin * K
    out_dtype = out_dtype or x.dtype
    out_bytes = jnp.dtype(out_dtype).itemsize

    flat_idx, wts = _bilinear_corners(sample_map.astype(jnp.float32), H, W)
    # Reorder the (small) index / weight maps so the gather result lands with
    # output positions on the lane axis and (corner, k) leading -> no big
    # transpose of the im2col tensor is ever needed.
    idx_t = jnp.transpose(flat_idx, (0, 3, 1, 2)).reshape(-1)     # (4*K*P,)
    wts_t = jnp.transpose(wts, (0, 3, 1, 2)).reshape(4, K, P)     # f32

    # TODO(synk): data-dependent corner gather stays in the XLA wrapper.
    # bf16 gather halves the im2col HBM traffic (review item for v5e+).
    x_flat = x.reshape(B, Cin, H * W).astype(jnp.bfloat16)
    g = jnp.take(x_flat, idx_t, axis=2).reshape(B, Cin, 4, K, P)
    # Bilinear combine + corner sum in f32, single bf16 rounding afterwards.
    sampled = (g.astype(jnp.float32) * wts_t[None, None]).sum(axis=2)   # (B, Cin, K, P)
    vals = sampled.reshape(B, CK, P).astype(jnp.bfloat16)               # lanes = positions

    w_mat = weight.reshape(Cout, CK).astype(jnp.bfloat16)               # (Cout, Cin*K)
    b_mat = bias.reshape(Cout, 1).astype(jnp.float32)

    tile_cout = _choose_tile_cout(Cout)
    n_cout = Cout // tile_cout
    cap = _vmem_capacity_bytes()
    if tile_p is None:
        tile_p = _choose_tile_p(P, B * n_cout, CK, tile_cout, out_bytes,
                                budget_bytes=int(0.4 * cap))

    Pp = -(-P // tile_p) * tile_p
    if Pp > P:
        vals = jnp.pad(vals, ((0, 0), (0, 0), (0, Pp - P)))

    grid = (B, n_cout, Pp // tile_p)

    # Conservative VMEM estimate: resident weight+bias (double-buffered by the
    # default pipeliner) + double-buffered vals-in / out streams + slack.
    est_vmem = (2 * (tile_cout * CK * 2 + tile_cout * 4)
                + 2 * tile_p * (CK * 2 + tile_cout * out_bytes)
                + (1 << 20))
    cp_kwargs = {"dimension_semantics": ("parallel", "parallel", "parallel")}
    if est_vmem > 12 * 2**20:
        cp_kwargs["vmem_limit_bytes"] = int(min(0.7 * cap, est_vmem * 1.5))

    out = pl.pallas_call(
        _mapped_conv_kernel,
        out_shape=jax.ShapeDtypeStruct((B, Cout, Pp), out_dtype),
        grid_spec=pltpu.PrefetchScalarGridSpec(
            num_scalar_prefetch=0,
            grid=grid,
            in_specs=[
                pl.BlockSpec((1, CK, tile_p), lambda b, j, i: (b, 0, i)),
                pl.BlockSpec((tile_cout, CK), lambda b, j, i: (j, 0)),
                pl.BlockSpec((tile_cout, 1), lambda b, j, i: (j, 0)),
            ],
            out_specs=pl.BlockSpec((1, tile_cout, tile_p), lambda b, j, i: (b, j, i)),
        ),
        compiler_params=pltpu.CompilerParams(**cp_kwargs),
    )(vals, w_mat, b_mat)

    out = out[:, :, :P].reshape(B, Cout, OH, OW)    # free reshape, no transpose
    return out


# ---------------------------------------------------------------------------
# Pure-JAX f32 reference (for sanity checking).
# ---------------------------------------------------------------------------
def mapped_convolution_ref(x, weight, bias, sample_map):
    B, Cin, H, W = x.shape
    Cout, _, K = weight.shape
    OH, OW = sample_map.shape[:2]
    flat_idx, wts = _bilinear_corners(sample_map.astype(jnp.float32), H, W)
    x_flat = x.reshape(B, Cin, H * W).astype(jnp.float32)
    vals = jnp.take(x_flat, flat_idx.reshape(-1), axis=2).reshape(B, Cin, 4, OH, OW, K)
    sampled = jnp.einsum("bcnhwk,nhwk->bchwk", vals, wts)
    out = jnp.einsum("bchwk,ock->bohw", sampled, weight.astype(jnp.float32))
    return out + bias.astype(jnp.float32)[None, :, None, None]


if __name__ == "__main__":
    key = jax.random.PRNGKey(0)
    B, Cin, H, W = 2, 4, 16, 16
    Cout, K = 8, 9           # kernel_size=9 (e.g. a 3x3 set of taps)
    OH, OW = 8, 8

    k_x, k_w, k_b, k_j = jax.random.split(key, 4)
    x = jax.random.normal(k_x, (B, Cin, H, W), dtype=jnp.float32)

    # Deterministic parameter init mirroring reset_parameters():
    # uniform(-stdv, stdv) with stdv = 1 / sqrt(in_channels * kernel_size)
    stdv = 1.0 / math.sqrt(Cin * K)
    weight = jax.random.uniform(k_w, (Cout, Cin, K), minval=-stdv, maxval=stdv,
                                dtype=jnp.float32)
    bias = jax.random.uniform(k_b, (Cout,), minval=-stdv, maxval=stdv,
                              dtype=jnp.float32)

    # sample_map: 3x3 taps around a stride-2 base grid with fractional jitter,
    # stored as (x, y) pixel coordinates: (OH, OW, K, 2)
    oy, ox = jnp.meshgrid(jnp.arange(OH, dtype=jnp.float32),
                          jnp.arange(OW, dtype=jnp.float32), indexing="ij")
    dy, dx = jnp.meshgrid(jnp.arange(-1.0, 2.0), jnp.arange(-1.0, 2.0), indexing="ij")
    base_x = 2.0 * ox[..., None] + dx.reshape(-1)[None, None, :]
    base_y = 2.0 * oy[..., None] + dy.reshape(-1)[None, None, :]
    jitter = 0.3 * jax.random.uniform(k_j, (OH, OW, K, 2), dtype=jnp.float32)
    sample_map = jnp.stack([base_x, base_y], axis=-1) + jitter

    out = mapped_convolution(x, weight, bias, sample_map)
    out = jax.block_until_ready(out)

    ref = mapped_convolution_ref(x, weight, bias, sample_map)
    assert out.shape == (B, Cout, OH, OW)
    # Samples and weights travel in bf16 (f32 MXU accumulation), so tolerance
    # is bf16-level rather than f32-level.
    assert bool(jnp.allclose(out, ref, atol=5e-2, rtol=5e-2))
    print("KERNEL_OK")
</pallas_src>

<mosaic_0001>
module attributes {stable_mosaic.version = 11 : i64} {
  func.func @_mapped_conv_kernel(%arg0: i32, %arg1: i32, %arg2: i32, %arg3: memref<1x36x64xbf16, #tpu.memory_space<vmem>>, %arg4: memref<8x36xbf16, #tpu.memory_space<vmem>>, %arg5: memref<8x1xf32, #tpu.memory_space<vmem>>, %arg6: memref<1x8x64xf32, #tpu.memory_space<vmem>>) attributes {dimension_semantics = [#tpu.dimension_semantics<parallel>, #tpu.dimension_semantics<parallel>, #tpu.dimension_semantics<parallel>], iteration_bounds = array<i64: 2, 1, 1>, scalar_prefetch = 0 : i64, scratch_operands = 0 : i64, tpu.core_type = #tpu.core_type<tc>, window_params = [{transform_indices = @transform_0, window_bounds = array<i64: 1, 36, 64>}, {transform_indices = @transform_1, window_bounds = array<i64: 8, 36>}, {transform_indices = @transform_2, window_bounds = array<i64: 8, 1>}, {transform_indices = @transform_3, window_bounds = array<i64: 1, 8, 64>}]} {
    %c0 = arith.constant 0 : index
    %c0_0 = arith.constant 0 : index
    %0 = vector.load %arg4[%c0, %c0_0] : memref<8x36xbf16, #tpu.memory_space<vmem>>, vector<8x36xbf16>
    %c0_1 = arith.constant 0 : index
    %c0_2 = arith.constant 0 : index
    %c0_3 = arith.constant 0 : index
    %1 = vector.load %arg3[%c0_1, %c0_2, %c0_3] : memref<1x36x64xbf16, #tpu.memory_space<vmem>>, vector<1x36x64xbf16>
    %2 = vector.shape_cast %1 : vector<1x36x64xbf16> to vector<36x64xbf16>
    %cst = arith.constant dense<0.000000e+00> : vector<8x64xf32>
    %3 = tpu.matmul %0, %2, %cst {dimension_numbers = #tpu.dot_dimension_numbers<[1], [0], [0], [1], [0, 0, 1, 1], [], []>} : vector<8x36xbf16>, vector<36x64xbf16>, vector<8x64xf32> -> vector<8x64xf32>
    %c0_4 = arith.constant 0 : index
    %c0_5 = arith.constant 0 : index
    %4 = vector.load %arg5[%c0_4, %c0_5] : memref<8x1xf32, #tpu.memory_space<vmem>>, vector<8x1xf32>
    %5 = vector.broadcast %4 : vector<8x1xf32> to vector<8x64xf32>
    %6 = arith.addf %3, %5 : vector<8x64xf32>
    %c0_6 = arith.constant 0 : index
    %c0_7 = arith.constant 0 : index
    %c0_8 = arith.constant 0 : index
    %7 = vector.load %arg6[%c0_6, %c0_7, %c0_8] : memref<1x8x64xf32, #tpu.memory_space<vmem>>, vector<1x8x64xf32>
    %8 = vector.shape_cast %7 : vector<1x8x64xf32> to vector<8x64xf32>
    %9 = vector.shape_cast %6 : vector<8x64xf32> to vector<1x8x64xf32>
    tpu.vector_store %arg6[%c0_6, %c0_7, %c0_8], %9 {strides = array<i32>} : memref<1x8x64xf32, #tpu.memory_space<vmem>>, vector<1x8x64xf32>,
    return
  }
  func.func @transform_0(%arg0: i32, %arg1: i32, %arg2: i32) -> (i32, i32, i32) {
    %c0_i32 = arith.constant 0 : i32
    %c0_i32_0 = arith.constant 0 : i32
    return %arg0, %c0_i32, %arg2 : i32, i32, i32
  }
  func.func @transform_1(%arg0: i32, %arg1: i32, %arg2: i32) -> (i32, i32) {
    %c0_i32 = arith.constant 0 : i32
    %c0_i32_0 = arith.constant 0 : i32
    return %arg1, %c0_i32 : i32, i32
  }
  func.func @transform_2(%arg0: i32, %arg1: i32, %arg2: i32) -> (i32, i32) {
    %c0_i32 = arith.constant 0 : i32
    %c0_i32_0 = arith.constant 0 : i32
    return %arg1, %c0_i32 : i32, i32
  }
  func.func @transform_3(%arg0: i32, %arg1: i32, %arg2: i32) -> (i32, i32, i32) {
    %c0_i32 = arith.constant 0 : i32
    return %arg0, %arg1, %arg2 : i32, i32, i32
  }
}

</mosaic_0001>

<bundles_post_ra>
// kernel: tpu_custom_call.1
= control target key start
LH: loop header
LB: loop body
LE: loop exit
PB: predicated region body
PF: predicated region fallthrough
CT: control target
= control target key end

     0   :  { %8 = vsyncpa [#allocation3], 0  ;;  %s700_s0 = inlined_call_operand.vmem [shape: bf16[2,36,64], index: 0, kind: input, shape index: {}]   ;;  %s701_s1 = inlined_call_operand.vmem [shape: bf16[8,36], index: 1, kind: input, shape index: {}]   ;;  %s702_s2 = inlined_call_operand.vmem [shape: f32[8,1], index: 2, kind: input, shape index: {}]   ;;  %s703_s3 = inlined_call_operand.hbm [shape: f32[2,8,64], index: 3, kind: output, shape index: {}]  }
   0x1   :  { %10 = vsyncpa [#allocation3 + $0x1], 0  ;;  %s597_s12 = smov 0   ;;  %s599_s13 = smov 0  }
   0x2   :  { %s601_s14 = smov 0   ;;  %s603_s15 = smov 0  }
   0x3   :  { %s605_s16 = smov 0   ;;  %s607_s17 = smov 0  }
   0x4 LB: > { %s414_s18 = sadd.s32 4294967295, %s574_s17   ;;  %s415_s19 = sadd.s32 4294967294, %s574_s17   ;;  %s574_s17 = sphi %s607_s17, %s16_s17   ;;  %s570_s16 = sphi %s605_s16, %s710_s16   ;;  %s566_s15 = sphi %s603_s15, %s709_s15   ;;  %s562_s14 = sphi %s601_s14, %s708_s14   ;;  %s558_s13 = sphi %s599_s13, %s707_s13   ;;  %s554_s12 = sphi %s597_s12, %s706_s12  }
   0x5   : > { %s35_s20 = sadd.s32 1, %s570_s16  ;;  %s126_s21 = sadd.s32 1, %s562_s14 }
   0x6   : > { %p37_p0 = scmp.ge.s32.totalorder %s35_s20, 2  ;;  %p136_p1 = scmp.ne.s32.totalorder %s562_s14, %s558_s13 }
   0x7   : > { %p137_p2 = scmp.eq.s32.totalorder %s414_s18, 1  ;;  %p142_p3 = scmp.ne.s32.totalorder %s558_s13, %s554_s12 }
   0x8   : > { %s712_s20 = smov (%p37_p0, %s35_s20), 0  ;;  %p143_p5 = scmp.eq.s32.totalorder %s415_s19, 1 }
   0x9   : > { %p637_p4 = por %p137_p2, %p136_p1  ;;  %s119_s23 = ssub.s32 %s570_s16, %s712_s20 }
   0xa   : > { %p420_p6 = scmp.ge.s32.totalorder %s574_s17, 1  ;;  %p124_p7 = scmp.eq.s32.totalorder %s119_s23, 0 }
   0xb   : > { %p644_p8 = por %p143_p5, %p142_p3  ;;  %p186_p9 = scmp.lt.s32.totalorder %s574_s17, 3 }
   0xc   : > { %s650_s25 = scalar_select %p124_p7, %s562_s14, %s126_s21  }
   0xd   : > { %p187_p10 = pnand %p420_p6, %p186_p9 }
   0xe   : > { %p221_p11 = scmp.lt.s32.totalorder (!%p187_p10), %s566_s15, 1  ;;  %s218_s8 = sand.u32 (!%p187_p10), 1, %s558_s13  }
   0xf   : > { %190 = sbr.rel (%p187_p10) target bundleno = 176 (0xb0), region = 32  ;;  %s433_s9 = sshll.u32 (!%p187_p10), %s566_s15, 3 }
  0x10   : > { %s421_s10 = sshll.u32 (!%p187_p10), %s218_s8, 3  ;;  %s301_s19 = scalar_lea.hbm (!%p187_p10), %s703_s3, %s433_s9 }
  0x11   : > { %s220_s21 = scalar_lea.vmem (!%p187_p10), [#allocation2], %s421_s10  ;;  %s305_s26 = sshll.u32 (!%p187_p10), %s301_s19, 4  ;;  %s306_s26 = int_to_ptr.hbm [resolvable:$true] %s305_s26 }
  0x12   : > { %s303_s23 = sshll.u32 (!%p187_p10), %s220_s21, 4  ;;  %s289_s27 = scalar_lea.sflag (!%p187_p10), [#allocation3], %s218_s8  ;;  %s304_s23 = int_to_ptr.vmem [resolvable:$true] %s303_s23 }
  0x13   : > { %s516_s4 = scalar_lea.hbm (!%p187_p10), %s703_s3, 16 }
  0x14   : > { %v576_v0 = vmov 0   ;;  %v244_v1 = vld [vmem:[%s702_s2] sm:$0xff]  ;;  %s222_s28 = scalar_select %p221_p11, %s566_s15, 1  ;;  %vm269_vm0 = vcmask 1041408   ;;  %vm265_vm1 = vcmask 293888   ;;  %vm286_vm2 = vcmask 523264  }
  0x15   : > { %495 = vset.pattern.permute.xlu0 %v576_v0  ;;  %v238_v8 = vld [vmem:[%s701_s1] sm:$0xf] }
  0x16   : > { %247 = vperm.xlu0 %495, %v244_v1   ;;  %s438_s29 = smul.u32 20, %s222_s28  ;;  %s510_s28 = sshra.s32 %s306_s26, 4  ;;  %s511_s28 = int_to_ptr.hbm [resolvable:$true] %s510_s28 }
  0x17   : > { %s512_s15 = scalar_lea.hbm %s511_s28, 8  ;;  %p517_p1 = scmp.lt.s32.totalorder %s511_s28, %s703_s3 }
  0x18   : > { %s228_s5 = scalar_lea.vmem %s700_s0, %s438_s29  ;;  %p513_p12 = scmp.ne.s32.totalorder %s511_s28, %s512_s15 }
  0x19   : > { %v243_v2 = vld [vmem:[%s228_s5 + $0x10] sm:$0x3]  ;;  %v437_v6 = vld [vmem:[%s228_s5 + $0x8] sm:$0xff]  ;;  %v436_v7 = vld [vmem:[%s228_s5] sm:$0xff]  ;;  %p518_p2 = scmp.lt.s32.totalorder %s516_s4, %s512_s15 }
  0x1a   : > { %v259_v3 = vunpack.c.l.b16 %v243_v2  ;;  %p514_p13 = pnand %p513_p12, %p637_p4 }
  0x1b   : > { %p519_p3 = por %p518_p2, %p517_p1 }
  0x1c   : > { %v262_v4 = vpack.c.b16 %v259_v3, %v259_v3  ;;  %p515_p0 = pneg %p514_p13 }
  0x1e   : > { %v271_v5 = vsel %vm269_vm0, %v262_v4, 0  ;;  %p520_p5 = pnand %p519_p3, %p515_p0 }
  0x1f   : > { %278 = vmatpush.bf16.msra.mxu0 %v271_v5 }
  0x23   : > { %279 = vmatpush.bf16.msra.mxu0 %v437_v6 }
  0x27   : > { %280 = vmatpush.bf16.msra.mxu0 %v436_v7 }
  0x2a   : > { %431 = vmatmul.msk.bf16.vlgmr.msra.gmra.mxu0 %vm265_vm1, %v238_v8 }
  0x88   : > { %v248_v9 = vpop.permute.xlu0 %247 }
  0xa7   : > { %v282_v10 = vpop.f32.mrf.mxu0 }
  0xa8   : > { %v283_v11 = vadd.f32 %v282_v10, %v248_v9 }
  0xaa   : > { %287 = vst.msk [vmem:[%s220_s21] sm:$0xff] %vm286_vm2, %v283_v11 }
  0xab   : > { %523 = shalt.err (!%p520_p5)
}
  0xac   : > { %439 = dma.vmem_to_hbm [thread:$0]  (%p637_p4), %s304_s23, 128, %s306_s26, %s289_s27  }
  0xaf   : > { %v284_v12 = vpop.f32.mrf.mxu0 }
  0xb0 PF: > { %p445_p6 = scmp.ge.s32.totalorder %s574_s17, 2  ;;  %s317_s7 = sand.u32 1, %s554_s12  }
  0xb1   : > { %s318_s8 = scalar_lea.sflag [#allocation3], %s317_s7 }
  0xb2   : > { %p442_p7 = pnand %p445_p6, %p644_p8 }
  0xb4   : > { %p443_p9 = pneg %p442_p7 }
  0xb6   : > { %549 = dma.done.wait (%p443_p9), %s318_s8, 128  }
  0xb7   : > { %551 = vsyncadd (%p443_p9), %s318_s8, 4294967168  ;;  %s16_s17 = sadd.s32 1, %s574_s17   ;;  %s706_s12 = smov %s558_s13 }
  0xb8   : > { %p13_p10 = scmp.ge.s32.totalorder %s16_s17, 4   ;;  %s707_s13 = smov %s562_s14 }
  0xb9   : > { %s708_s14 = smov %s650_s25  ;;  %s709_s15 = smov %s570_s16 }
  0xba   : > { %s710_s16 = smov %s712_s20  ;;  %15 = sbr.rel (!%p13_p10) target bundleno = 4 (0x4), region = 73 }
  0xbf   :  { %324 = vsyncpa [#allocation3], 1 }
  0xc0   :  { %326 = vsyncpa [#allocation3 + $0x1], 1 }

</bundles_post_ra>
